<compile_context>
chip_gen: v6e
topology: v6e:2x2x1
jax: 0.10.0
libtpu: 0.0.40
codegen_flags: <defaults>
</compile_context>

<pallas_src>
import functools

import jax
import jax.numpy as jnp
from jax.experimental import pallas as pl
from jax.experimental.pallas import tpu as pltpu


def _round_up(x: int, m: int) -> int:
    return ((x + m - 1) // m) * m


def _cdiv(a: int, b: int) -> int:
    return -(-a // b)


def _nce_kernel(pos_ref, neg_ref, o_ref, m_sc, s_sc, *,
                b_true: int, k_true: int, tb: int, tk: int, mask_k: bool):
    """Online logsumexp(-energies) with label 0, accumulated over class chunks.

    pos_ref: (tb, P)  positive energies (column 0 is the true class).
    neg_ref: (tb, tk) chunk of negative energies (lanes >= K are garbage, masked).
    o_ref:   (1, 8, 128) lane-dense block holding this batch tile's partial loss sum.
    m_sc/s_sc: (tb, 1) running min-energy / sum-exp scratch, f32.
    """
    i = pl.program_id(0)
    k = pl.program_id(1)
    nk = pl.num_programs(1)

    neg = neg_ref[...].astype(jnp.float32)                       # (tb, tk)
    if mask_k:
        col = k * tk + jax.lax.broadcasted_iota(jnp.int32, neg.shape, 1)
        neg = jnp.where(col < k_true, neg, jnp.inf)              # exp(-inf)=0, min ignores

    chunk_min = jnp.min(neg, axis=-1, keepdims=True)             # (tb, 1)

    @pl.when(k == 0)
    def _():
        # Seed the running stats with the positive class columns.
        pos = pos_ref[...].astype(jnp.float32)                   # (tb, P)
        m0 = jnp.min(pos, axis=-1, keepdims=True)
        s0 = jnp.sum(jnp.exp(m0 - pos), axis=-1, keepdims=True)
        m_sc[...] = m0
        s_sc[...] = s0

    # logsumexp(-e) = -m + log(sum exp(m - e)) with m = min(e); online update over chunks.
    m_prev = m_sc[...]
    s_prev = s_sc[...]
    m_new = jnp.minimum(m_prev, chunk_min)
    s_new = s_prev * jnp.exp(m_new - m_prev) + \
        jnp.sum(jnp.exp(m_new - neg), axis=-1, keepdims=True)
    m_sc[...] = m_new
    s_sc[...] = s_new

    @pl.when(k == nk - 1)
    def _():
        pos0 = pos_ref[...].astype(jnp.float32)[:, 0:1]          # true-class energy
        per_ex = pos0 - m_new + jnp.log(s_new)                   # CE with label 0
        # Mask batch-overhang rows (unspecified data from the edge tile): select, not multiply.
        row = i * tb + jax.lax.broadcasted_iota(jnp.int32, per_ex.shape, 0)
        per_ex = jnp.where(row < b_true, per_ex, 0.0)
        part = jnp.sum(per_ex, axis=0, keepdims=True)            # (1, 1)
        o_ref[...] = jnp.broadcast_to(part[None], o_ref.shape)   # lane/sublane-dense store


def nce_loss(energy, fake_energy, *, block_b=None, block_k=None, force_kernel=False):
    """energy: (B, P) (P typically 1), fake_energy: (B, K, 1). Returns scalar f32 loss."""
    fake2d = jnp.squeeze(fake_energy, axis=-1)                   # (B, K), matches .squeeze(-1)
    B, P = energy.shape
    K = fake2d.shape[1]

    # Small-input fast path: pallas launch + lane padding overhead beats plain XLA here.
    if not force_kernel and B * (P + K) < 64 * 1024:
        logits = -jnp.concatenate([energy, fake2d], axis=1).astype(jnp.float32)
        lse = jax.scipy.special.logsumexp(logits, axis=-1)
        return jnp.mean(lse - logits[:, 0])

    neg_item = jnp.dtype(fake2d.dtype).itemsize
    pos_item = jnp.dtype(energy.dtype).itemsize
    sub = 16 if min(neg_item, pos_item) < 4 else 8               # sublane packing for <32-bit

    # Generation-gated VMEM budget (v7x: 64 MiB physical -> 48 MiB limit; v5e/v6e: 64 MiB).
    try:
        vmem_cap = pltpu.get_tpu_info().vmem_capacity_bytes
    except Exception:
        vmem_cap = 64 * 2**20
    vmem_limit = int(min(64 * 2**20, (vmem_cap * 3) // 4))
    # Per single-buffered negatives tile; total use ~ 2x (double buffer) + f32 upcast temp
    # (<= 2x for bf16) + tiny scratch, so <= ~vmem_limit/2 with headroom.
    tile_budget = vmem_limit // 8

    # Class chunk: full extent when even `sub` rows of the whole row fit, else 128-multiples.
    if block_k is None:
        if sub * K * neg_item <= tile_budget:
            block_k = K
        else:
            block_k = max(128, (tile_budget // (sub * neg_item)) // 128 * 128)
    if block_k != K:
        block_k = _round_up(block_k, 128)

    # Batch tile: size by bytes, keep >= ~4 tiles so both v7x TensorCores get work.
    if block_b is None:
        block_b = tile_budget // max(1, block_k * neg_item)
        block_b = max(sub, (block_b // sub) * sub)
        if B > sub:
            tc_cap = max(sub, _round_up(_cdiv(B, 4), sub))
            block_b = min(block_b, tc_cap)
        block_b = min(block_b, _round_up(B, sub))
    block_b = max(sub, (block_b // sub) * sub)

    n_b = _cdiv(B, block_b)
    n_k = _cdiv(K, block_k)
    mask_k = (n_k * block_k != K)

    kernel = functools.partial(_nce_kernel, b_true=B, k_true=K,
                               tb=block_b, tk=block_k, mask_k=mask_k)

    partials = pl.pallas_call(
        kernel,
        out_shape=jax.ShapeDtypeStruct((n_b, 8, 128), jnp.float32),
        grid_spec=pltpu.PrefetchScalarGridSpec(
            num_scalar_prefetch=0,
            grid=(n_b, n_k),
            in_specs=[
                pl.BlockSpec((block_b, P), lambda i, k: (i, 0)),        # positives (resident over k)
                pl.BlockSpec((block_b, block_k), lambda i, k: (i, k)),  # negatives (streamed)
            ],
            out_specs=pl.BlockSpec((1, 8, 128), lambda i, k: (i, 0, 0)),
            scratch_shapes=[pltpu.VMEM((block_b, 1), jnp.float32),
                            pltpu.VMEM((block_b, 1), jnp.float32)],
        ),
        compiler_params=pltpu.CompilerParams(
            dimension_semantics=("parallel", "arbitrary"),
            vmem_limit_bytes=vmem_limit,
        ),
    )(energy, fake2d)

    # Finish the mean over the true batch size in the wrapper.
    return jnp.sum(partials[:, 0, 0]) / B


def _reference(energy, fake_energy):
    # Pure-JAX reference of the PyTorch forward, for sanity checking.
    all_e = jnp.concatenate([energy, jnp.squeeze(fake_energy, -1)], axis=1)
    logits = -all_e.astype(jnp.float32)
    lse = jax.scipy.special.logsumexp(logits, axis=-1)
    return jnp.mean(lse - logits[:, 0])


if __name__ == "__main__":
    key = jax.random.PRNGKey(0)
    k1, k2 = jax.random.split(key)

    # 1) Small shapes implied by the module: batch=8, one positive energy, K=15 negatives.
    B, K = 8, 15
    energy = jax.random.normal(k1, (B, 1), dtype=jnp.float32)
    fake_energy = jax.random.normal(k2, (B, K, 1), dtype=jnp.float32)
    loss = jax.block_until_ready(nce_loss(energy, fake_energy, force_kernel=True))
    ref = jax.block_until_ready(_reference(energy, fake_energy))
    assert jnp.allclose(loss, ref, atol=1e-5, rtol=1e-5), (loss, ref)

    # 2) Multi-tile batch grid + partial last batch tile (overhang masking).
    B2, K2 = 20, 200
    e2 = jax.random.normal(k1, (B2, 1), dtype=jnp.float32)
    f2 = jax.random.normal(k2, (B2, K2, 1), dtype=jnp.float32)
    loss2 = jax.block_until_ready(nce_loss(e2, f2, block_b=8, force_kernel=True))
    ref2 = jax.block_until_ready(_reference(e2, f2))
    assert jnp.allclose(loss2, ref2, atol=1e-5, rtol=1e-5), (loss2, ref2)

    # 3) Chunked class axis (online logsumexp over 3 chunks) + class-lane overhang masking.
    B3, K3 = 24, 300
    e3 = jax.random.normal(k1, (B3, 1), dtype=jnp.float32)
    f3 = jax.random.normal(k2, (B3, K3, 1), dtype=jnp.float32)
    loss3 = jax.block_until_ready(nce_loss(e3, f3, block_b=8, block_k=128, force_kernel=True))
    ref3 = jax.block_until_ready(_reference(e3, f3))
    assert jnp.allclose(loss3, ref3, atol=1e-5, rtol=1e-5), (loss3, ref3)

    # 4) bf16 inputs stay bf16 in HBM; upcast happens in-register inside the kernel.
    B4, K4 = 20, 64
    e4 = jax.random.normal(k1, (B4, 1), dtype=jnp.bfloat16)
    f4 = jax.random.normal(k2, (B4, K4, 1), dtype=jnp.bfloat16)
    loss4 = jax.block_until_ready(nce_loss(e4, f4, force_kernel=True))
    ref4 = jax.block_until_ready(_reference(e4, f4))
    assert jnp.allclose(loss4, ref4, atol=1e-4, rtol=1e-4), (loss4, ref4)

    print("KERNEL_OK")
</pallas_src>

<mosaic_0001>
module attributes {stable_mosaic.version = 11 : i64} {
  func.func @_nce_kernel(%arg0: i32, %arg1: i32, %arg2: memref<8x1xf32, #tpu.memory_space<vmem>>, %arg3: memref<8x15xf32, #tpu.memory_space<vmem>>, %arg4: memref<1x8x128xf32, #tpu.memory_space<vmem>>, %arg5: memref<8x1xf32, #tpu.memory_space<vmem>>, %arg6: memref<8x1xf32, #tpu.memory_space<vmem>>) attributes {dimension_semantics = [#tpu.dimension_semantics<parallel>, #tpu.dimension_semantics<arbitrary>], iteration_bounds = array<i64: 1, 1>, scalar_prefetch = 0 : i64, scratch_operands = 2 : i64, tpu.core_type = #tpu.core_type<tc>, window_params = [{transform_indices = @transform_0, window_bounds = array<i64: 8, 1>}, {transform_indices = @transform_1, window_bounds = array<i64: 8, 15>}, {transform_indices = @transform_2, window_bounds = array<i64: 1, 8, 128>}]} {
    %c0 = arith.constant 0 : index
    %c0_0 = arith.constant 0 : index
    %0 = vector.load %arg3[%c0, %c0_0] : memref<8x15xf32, #tpu.memory_space<vmem>>, vector<8x15xf32>
    %cst = arith.constant dense<0x7F800000> : vector<8xf32>
    %1 = vector.multi_reduction <minimumf>, %0, %cst [1] : vector<8x15xf32> to vector<8xf32>
    %2 = vector.shape_cast %1 : vector<8xf32> to vector<8x1xf32>
    %c0_i32 = arith.constant 0 : i32
    %3 = arith.cmpi eq, %arg1, %c0_i32 : i32
    %4 = arith.extui %3 : i1 to i32
    %c0_i32_1 = arith.constant 0 : i32
    %5 = arith.cmpi ne, %4, %c0_i32_1 : i32
    scf.if %5 {
      %c0_13 = arith.constant 0 : index
      %c0_14 = arith.constant 0 : index
      %23 = vector.load %arg2[%c0_13, %c0_14] : memref<8x1xf32, #tpu.memory_space<vmem>>, vector<8x1xf32>
      %cst_15 = arith.constant dense<0x7F800000> : vector<8xf32>
      %24 = vector.multi_reduction <minimumf>, %23, %cst_15 [1] : vector<8x1xf32> to vector<8xf32>
      %25 = vector.shape_cast %24 : vector<8xf32> to vector<8x1xf32>
      %26 = arith.subf %25, %23 : vector<8x1xf32>
      %27 = math.exp %26 : vector<8x1xf32>
      %cst_16 = arith.constant dense<0.000000e+00> : vector<8xf32>
      %28 = vector.multi_reduction <add>, %27, %cst_16 [1] : vector<8x1xf32> to vector<8xf32>
      %29 = vector.shape_cast %28 : vector<8xf32> to vector<8x1xf32>
      %c0_17 = arith.constant 0 : index
      %c0_18 = arith.constant 0 : index
      %30 = vector.load %arg5[%c0_17, %c0_18] : memref<8x1xf32, #tpu.memory_space<vmem>>, vector<8x1xf32>
      tpu.vector_store %arg5[%c0_17, %c0_18], %25 {strides = array<i32>} : memref<8x1xf32, #tpu.memory_space<vmem>>, vector<8x1xf32>,
      %c0_19 = arith.constant 0 : index
      %c0_20 = arith.constant 0 : index
      %31 = vector.load %arg6[%c0_19, %c0_20] : memref<8x1xf32, #tpu.memory_space<vmem>>, vector<8x1xf32>
      tpu.vector_store %arg6[%c0_19, %c0_20], %29 {strides = array<i32>} : memref<8x1xf32, #tpu.memory_space<vmem>>, vector<8x1xf32>,
    } else {
    }
    %c0_2 = arith.constant 0 : index
    %c0_3 = arith.constant 0 : index
    %6 = vector.load %arg5[%c0_2, %c0_3] : memref<8x1xf32, #tpu.memory_space<vmem>>, vector<8x1xf32>
    %c0_4 = arith.constant 0 : index
    %c0_5 = arith.constant 0 : index
    %7 = vector.load %arg6[%c0_4, %c0_5] : memref<8x1xf32, #tpu.memory_space<vmem>>, vector<8x1xf32>
    %8 = arith.minimumf %6, %2 : vector<8x1xf32>
    %9 = arith.subf %8, %6 : vector<8x1xf32>
    %10 = math.exp %9 : vector<8x1xf32>
    %11 = arith.mulf %7, %10 : vector<8x1xf32>
    %12 = vector.broadcast %8 : vector<8x1xf32> to vector<8x15xf32>
    %13 = arith.subf %12, %0 : vector<8x15xf32>
    %14 = math.exp %13 : vector<8x15xf32>
    %cst_6 = arith.constant dense<0.000000e+00> : vector<8xf32>
    %15 = vector.multi_reduction <add>, %14, %cst_6 [1] : vector<8x15xf32> to vector<8xf32>
    %16 = vector.shape_cast %15 : vector<8xf32> to vector<8x1xf32>
    %17 = arith.addf %11, %16 : vector<8x1xf32>
    %c0_7 = arith.constant 0 : index
    %c0_8 = arith.constant 0 : index
    %18 = vector.load %arg5[%c0_7, %c0_8] : memref<8x1xf32, #tpu.memory_space<vmem>>, vector<8x1xf32>
    tpu.vector_store %arg5[%c0_7, %c0_8], %8 {strides = array<i32>} : memref<8x1xf32, #tpu.memory_space<vmem>>, vector<8x1xf32>,
    %c0_9 = arith.constant 0 : index
    %c0_10 = arith.constant 0 : index
    %19 = vector.load %arg6[%c0_9, %c0_10] : memref<8x1xf32, #tpu.memory_space<vmem>>, vector<8x1xf32>
    tpu.vector_store %arg6[%c0_9, %c0_10], %17 {strides = array<i32>} : memref<8x1xf32, #tpu.memory_space<vmem>>, vector<8x1xf32>,
    %c0_i32_11 = arith.constant 0 : i32
    %20 = arith.cmpi eq, %arg1, %c0_i32_11 : i32
    %21 = arith.extui %20 : i1 to i32
    %c0_i32_12 = arith.constant 0 : i32
    %22 = arith.cmpi ne, %21, %c0_i32_12 : i32
    scf.if %22 {
      %c0_13 = arith.constant 0 : index
      %c0_14 = arith.constant 0 : index
      %23 = vector.load %arg2[%c0_13, %c0_14] : memref<8x1xf32, #tpu.memory_space<vmem>>, vector<8x1xf32>
      %24 = arith.subf %23, %8 : vector<8x1xf32>
      %25 = math.log %17 : vector<8x1xf32>
      %26 = arith.addf %24, %25 : vector<8x1xf32>
      %c8_i32 = arith.constant 8 : i32
      %27 = arith.muli %arg0, %c8_i32 : i32
      %28 = tpu.iota {dimensions = array<i32: 0>} : vector<8x1xi32>
      %29 = vector.broadcast %27 : i32 to vector<8x1xi32>
      %30 = arith.addi %29, %28 : vector<8x1xi32>
      %c8_i32_15 = arith.constant 8 : i32
      %31 = vector.broadcast %c8_i32_15 : i32 to vector<8x1xi32>
      %32 = arith.cmpi slt, %30, %31 : vector<8x1xi32>
      %cst_16 = arith.constant 0.000000e+00 : f32
      %33 = vector.broadcast %cst_16 : f32 to vector<8x1xf32>
      %34 = arith.select %32, %26, %33 : vector<8x1xi1>, vector<8x1xf32>
      %cst_17 = arith.constant dense<0.000000e+00> : vector<1xf32>
      %35 = vector.multi_reduction <add>, %34, %cst_17 [0] : vector<8x1xf32> to vector<1xf32>
      %36 = vector.shape_cast %35 : vector<1xf32> to vector<1x1xf32>
      %37 = vector.shape_cast %36 : vector<1x1xf32> to vector<1x1x1xf32>
      %38 = vector.shape_cast %37 : vector<1x1x1xf32> to vector<1x1x1xf32>
      %39 = vector.broadcast %38 : vector<1x1x1xf32> to vector<1x8x128xf32>
      %c0_18 = arith.constant 0 : index
      %c0_19 = arith.constant 0 : index
      %c0_20 = arith.constant 0 : index
      %40 = vector.load %arg4[%c0_18, %c0_19, %c0_20] : memref<1x8x128xf32, #tpu.memory_space<vmem>>, vector<1x8x128xf32>
      tpu.vector_store %arg4[%c0_18, %c0_19, %c0_20], %39 {strides = array<i32>} : memref<1x8x128xf32, #tpu.memory_space<vmem>>, vector<1x8x128xf32>,
    } else {
    }
    return
  }
  func.func @transform_0(%arg0: i32, %arg1: i32) -> (i32, i32) {
    %c0_i32 = arith.constant 0 : i32
    %c0_i32_0 = arith.constant 0 : i32
    return %arg0, %c0_i32 : i32, i32
  }
  func.func @transform_1(%arg0: i32, %arg1: i32) -> (i32, i32) {
    %c0_i32 = arith.constant 0 : i32
    return %arg0, %arg1 : i32, i32
  }
  func.func @transform_2(%arg0: i32, %arg1: i32) -> (i32, i32, i32) {
    %c0_i32 = arith.constant 0 : i32
    %c0_i32_0 = arith.constant 0 : i32
    %c0_i32_1 = arith.constant 0 : i32
    return %arg0, %c0_i32, %c0_i32_0 : i32, i32, i32
  }
}

</mosaic_0001>

<bundles_post_ra>
// kernel: tpu_custom_call.1
= control target key start
LH: loop header
LB: loop body
LE: loop exit
PB: predicated region body
PF: predicated region fallthrough
CT: control target
= control target key end

     0   :  { %vm13_vm0 = vcmask 121856   ;;  %vm26_vm1 = vcmask 7168   ;;  %s160_s0 = inlined_call_operand.vmem [shape: f32[8,1], index: 0, kind: input, shape index: {}]   ;;  %s161_s1 = inlined_call_operand.vmem [shape: f32[8,15], index: 1, kind: input, shape index: {}]   ;;  %s162_s2 = inlined_call_operand.hbm [shape: f32[1,8,128], index: 2, kind: output, shape index: {}]  }
   0x1   :  { %v12_v0 = vld [vmem:[%s161_s1] sm:$0xff] }
   0x2   :  { %v21_v1 = vld [vmem:[%s160_s0] sm:$0xff] }
   0x3   :  { %7 = vsyncpa [#allocation5], 0  ;;  %v14_v2 = vsel %vm13_vm0, %v12_v0, inf  ;;  %v22_v3 = vsub.f32 %v21_v1, %v21_v1  ;;  %27 = vst.msk [vmem:[#allocation2] sm:$0xff] %vm26_vm1, %v21_v1  ;;  %v127_v5 = vmov 0   ;;  %s128_s0 = smov [#allocation4]  }
   0x4   :  { %15 = vmin.xlane.f32.xlu0 %v14_v2  ;;  %96 = vset.pattern.permute.xlu1 %v127_v5  ;;  %s85_s1 = sshll.u32 %s128_s0, 4  ;;  %s86_s1 = int_to_ptr.vmem [resolvable:$true] %s85_s1 }
   0x5   :  { %v23_v4 = vmul.f32 1.442695, %v22_v3  ;;  %95 = vset.pattern.permute.xlu0 %v127_v5  ;;  %s105_s13 = scalar_lea.vmem %s86_s1, 128  ;;  %p110_p1 = scmp.lt.s32.totalorder %s86_s1, %s86_s1 }
   0x6   :  { %p106_p0 = scmp.ne.s32.totalorder %s86_s1, %s105_s13  ;;  %p111_p2 = scmp.lt.s32.totalorder %s105_s13, %s105_s13 }
   0x7   :  { %97 = vpow2.f32 %v23_v4 }
   0x8   :  { %p112_p3 = por %p111_p2, %p110_p1 }
   0xa   :  { %v29_v7 = vld [vmem:[#allocation2] sm:$0xff]  ;;  %p113_p4 = pnand %p112_p3, %p106_p0 }
  0x14   :  { %v98_v6 = vpop.eup %97 }
  0x15   :  { %28 = vst.msk [vmem:[#allocation3] sm:$0xff] %vm26_vm1, %v98_v6 }
  0x1c   :  { %v30_v18 = vld [vmem:[#allocation3] sm:$0xff] }
  0x8d   :  { %v16_v8 = vpop.xlane.xlu0 %15 }
  0x8e   :  { %v31_v9 = vmin.f32 %v29_v7, %v16_v8 }
  0x90   :  { %v32_v10 = vsub.f32 %v31_v9, %v29_v7  ;;  %49 = vst.msk [vmem:[#allocation2] sm:$0xff] %vm26_vm1, %v31_v9  ;;  %38 = vperm.xlu0 %95, %v31_v9   ;;  %v55_v23 = vsub.f32 %v21_v1, %v31_v9 }
  0x92   :  { %v33_v16 = vmul.f32 1.442695, %v32_v10 }
 0x10b   :  { %v39_v11 = vpop.permute.xlu0 %38 }
 0x10c   :  { %v41_v12 = vsub.f32 %v39_v11, %v12_v0 }
 0x10e   :  { %v42_v13 = vmul.f32 1.442695, %v41_v12 }
 0x110   :  { %99 = vpow2.f32 %v42_v13 }
 0x111   :  { %101 = vpow2.f32 %v33_v16 }
 0x11d   :  { %v100_v14 = vpop.eup %99 }
 0x11e   :  { %v44_v15 = vsel %vm13_vm0, %v100_v14, 0.0  ;;  %v102_v17 = vpop.eup %101 }
 0x11f   :  { %45 = vadd.xlane.f32.xlu1 %v44_v15  ;;  %v35_v19 = vmul.f32 %v102_v17, %v30_v18 }
 0x1a8   :  { %v46_v20 = vpop.xlane.xlu1 %45 }
 0x1a9   :  { %v47_v21 = vadd.f32 %v46_v20, %v35_v19 }
 0x1ab   :  { %50 = vst.msk [vmem:[#allocation3] sm:$0xff] %vm26_vm1, %v47_v21  ;;  %103 = vlog2.f32 %v47_v21 }
 0x1b8   :  { %v104_v22 = vpop.eup %103 }
 0x1b9   :  { %v57_v24 = vmul.f32 0.6931472, %v104_v22 }
 0x1bb   :  { %v58_v25 = vadd.f32 %v57_v24, %v55_v23 }
 0x1bd   :  { %v66_v26 = vsel %vm26_vm1, %v58_v25, 0.0 }
 0x1be   :  { %v67_v27 = vrot.slane %v66_v26, 4 }
 0x1c0   :  { %v68_v28 = vadd.f32 %v67_v27, %v66_v26 }
 0x1c2   :  { %v69_v29 = vrot.slane %v68_v28, 2 }
 0x1c4   :  { %v70_v30 = vadd.f32 %v69_v29, %v68_v28 }
 0x1c6   :  { %v71_v31 = vrot.slane %v70_v30, 1 }
 0x1c8   :  { %v72_v32 = vadd.f32 %v71_v31, %v70_v30 }
 0x1ca   :  { %75 = vperm.xlu1 %96, %v72_v32  }
 0x245   :  { %v76_v33 = vpop.permute.xlu1 %75 }
 0x246   :  { %78 = vst [vmem:[#allocation4] sm:$0xff] %v76_v33 }
 0x247   :  { %116 = shalt.err (!%p113_p4)
}
 0x248   :  { %88 = dma.vmem_to_hbm [thread:$0]  %s86_s1, 128, %s162_s2, [#allocation5]  }
 0x249   :  { %125 = dma.done.wait [#allocation5], 128  }
 0x24a   :  { %126 = vsyncadd [#allocation5], 4294967168 }
 0x24b   :  { %92 = vsyncpa [#allocation5], 1 }

</bundles_post_ra>
